<compile_context>
chip_gen: v7x
topology: tpu7x:2x2x1
jax: 0.10.0
libtpu: 0.0.40
codegen_flags: <defaults>
</compile_context>

<pallas_src>
import jax
import jax.numpy as jnp
from jax import lax
from jax.experimental import pallas as pl
from jax.experimental.pallas import tpu as pltpu

NEG_SLOPE = 0.01  # F.leaky_relu default negative_slope


def mlp_n_kernel(x_ref, w_ref, b_ref, o_ref):
    # x_ref: (TB, K), w_ref: (4, K), b_ref: (4, 1), o_ref: (4, TB)
    x = x_ref[...]                          # keep native dtype (bf16 stays bf16 on the MXU)
    # Deliberate: weights follow the activation dtype so the MXU runs at native width;
    # accumulation is still f32 via preferred_element_type.
    w = w_ref[...].astype(x.dtype)

    # z[c, b] = sum_k w[c, k] * x[b, k]  ->  (4, TB), batch on the lane axis.
    # NOTE(perf review): contraction is on x's last dim (transposed-RHS matmul).  The
    # kernel is DMA-bound, so any Mosaic-inserted transpose of the x tile is hidden;
    # verify with pl.lower_as_mlir / bundle dump if the vector-extended slot ever binds.
    z = lax.dot_general(
        w, x,
        dimension_numbers=(((1,), (1,)), ((), ())),
        preferred_element_type=jnp.float32,
    )
    z = z + b_ref[...].astype(jnp.float32)            # (4, TB) + (4, 1) broadcast

    # Leaky ReLU
    z = jnp.where(z > 0, z, NEG_SLOPE * z)

    # Softmax over the 4 classes (sublane axis), fully unrolled: 3 max + 3 add on the
    # VALU instead of a cross-lane/XLU reduction.  Exact divide for exact row sums.
    z0, z1, z2, z3 = z[0:1, :], z[1:2, :], z[2:3, :], z[3:4, :]
    m = jnp.maximum(jnp.maximum(z0, z1), jnp.maximum(z2, z3))   # (1, TB)
    e = jnp.exp(z - m)                                          # (4, TB)
    s = e[0:1, :] + e[1:2, :] + e[2:3, :] + e[3:4, :]           # (1, TB)
    o_ref[...] = (e / s).astype(o_ref.dtype)


def _round_up(x, m):
    return ((x + m - 1) // m) * m


def _vmem_limits():
    """(vmem_limit_bytes, x_double_buffer_budget_bytes) derived from the chip.

    Leaves headroom for the out/w/b buffers and compiler-internal scratch: limit is
    capped at 56 MiB (safe on v7x's 64 MiB/TC, ample on v5e/v6e's 128 MiB), the x
    budget at 24 MiB.
    """
    cap = None
    try:
        cap = getattr(pltpu.get_tpu_info(), "vmem_capacity_bytes", None)
    except Exception:
        cap = None
    if not cap:
        cap = 64 << 20  # conservative fallback: v7x per-TC VMEM
    cap = int(cap)
    limit = max(32 << 20, min(cap - (12 << 20), 56 << 20))
    x_budget = min(24 << 20, cap // 3)
    return limit, x_budget


def _pick_tile_b(B, n_mlp, itemsize, *, x_budget_bytes, target_step_bytes=4 << 20):
    """Batch-tile size for the streamed x input.

    Sized for DMA amortization (per-step *padded* x traffic ~target_step_bytes, large
    vs. the ~0.35 us step overhead) and capped so the double-buffered x block stays
    inside x_budget_bytes.  Uses the real (8,128)-tiled footprint: K pads to a
    multiple of 128 lanes, so n_mlp=32..64 costs 128 lanes per row.
    """
    if B <= 128:
        return B  # single full-array block (block dims == array dims is always legal)

    k_padded = _round_up(max(n_mlp, 1), 128)
    row_bytes = k_padded * itemsize

    target_rows = max(128, target_step_bytes // row_bytes)
    vmem_rows = max(128, x_budget_bytes // (2 * row_bytes))  # 2 = double buffering
    tile_b = min(target_rows, vmem_rows)
    tile_b = max(128, (tile_b // 128) * 128)

    # Never bigger than (rounded-up) B ...
    tile_b = min(tile_b, _round_up(B, 128))
    # ... and prefer >= 2 grid steps so both v7x TensorCores get work and in/out DMA
    # overlaps compute on v5e/v6e.
    if tile_b >= B:
        tile_b = max(128, _round_up(pl.cdiv(B, 2), 128))
    return tile_b


def mlp_n_forward(mlp_in, weight, bias, *, tile_b=None, return_transposed=False):
    """mlp_in: (B, n_mlp); weight: (4, n_mlp) (PyTorch layout); bias: (4,).

    Returns (B, 4) softmax weights (PyTorch semantics).  Pass return_transposed=True
    to get the kernel-native lane-dense (4, B) layout and skip the extra HBM pass.
    """
    B, n_mlp = mlp_in.shape
    out_f = weight.shape[0]  # 4

    vmem_limit, x_budget = _vmem_limits()
    if tile_b is None:
        tile_b = _pick_tile_b(
            B, n_mlp, jnp.dtype(mlp_in.dtype).itemsize, x_budget_bytes=x_budget
        )
    # (8,128) rule: x block (tile_b, n_mlp) needs tile_b % 8 == 0 (or tile_b == B);
    # lane-dense out block (out_f, tile_b) needs tile_b % 128 == 0 (or tile_b == B).
    assert tile_b == B or tile_b % 128 == 0, "tile_b must be a multiple of 128 (or == B)"

    grid = (pl.cdiv(B, tile_b),)  # ragged last block handled by Pallas partial-block masking
    b2 = bias.reshape(out_f, 1)

    # TODO(synk): if profiling on v6e shows exposed per-step DMA gaps, add
    # pipeline_mode=pl.Buffered(3) on the x BlockSpec (VMEM headroom permits it there);
    # w/b could also use Buffered(1) for a few KiB of VMEM hygiene.
    out_t = pl.pallas_call(
        mlp_n_kernel,
        out_shape=jax.ShapeDtypeStruct((out_f, B), mlp_in.dtype),
        grid_spec=pltpu.PrefetchScalarGridSpec(
            num_scalar_prefetch=0,
            grid=grid,
            in_specs=[
                # x streams along the batch axis; w/b are constant-index (stay resident).
                pl.BlockSpec((tile_b, n_mlp), lambda i: (i, 0)),
                pl.BlockSpec((out_f, n_mlp), lambda i: (0, 0)),
                pl.BlockSpec((out_f, 1), lambda i: (0, 0)),
            ],
            out_specs=pl.BlockSpec((out_f, tile_b), lambda i: (0, i)),
        ),
        compiler_params=pltpu.CompilerParams(
            dimension_semantics=("parallel",),
            vmem_limit_bytes=vmem_limit,
        ),
    )(mlp_in, weight, b2)

    if return_transposed:
        return out_t      # (4, B): lane-dense, no extra transpose kernel
    return out_t.T        # (B, 4): matches the PyTorch module's output layout


def _reference(x, weight, bias):
    z = x.astype(jnp.float32) @ weight.astype(jnp.float32).T + bias.astype(jnp.float32)
    z = jnp.where(z > 0, z, NEG_SLOPE * z)
    return jax.nn.softmax(z, axis=1)


if __name__ == "__main__":
    key = jax.random.PRNGKey(0)

    def run_case(B, n_mlp, dtype=jnp.float32):
        out_f = 4
        k_x, k_w, k_b = jax.random.split(jax.random.fold_in(key, B), 3)
        bound = 1.0 / (n_mlp ** 0.5)
        weight = jax.random.uniform(k_w, (out_f, n_mlp), jnp.float32, -bound, bound).astype(dtype)
        bias = jax.random.uniform(k_b, (out_f,), jnp.float32, -bound, bound).astype(dtype)
        x = jax.random.normal(k_x, (B, n_mlp), jnp.float32).astype(dtype)

        out = jax.block_until_ready(mlp_n_forward(x, weight, bias))
        ref = _reference(x, weight, bias)

        assert out.shape == (B, out_f)
        assert jnp.allclose(out.astype(jnp.float32), ref, atol=1e-3, rtol=1e-3)
        assert jnp.allclose(jnp.sum(out.astype(jnp.float32), axis=1), 1.0, atol=1e-3)

    run_case(8, 32)     # tiny shape: single full-array block path
    run_case(512, 64)   # 128-aligned batch: multi-step pipelined lane-dense path
    run_case(300, 64)   # non-aligned batch: cdiv grid with masked partial last block

    print("KERNEL_OK")
</pallas_src>

<mosaic_0001>
module attributes {stable_mosaic.version = 11 : i64} {
  func.func @mlp_n_kernel(%arg0: i32, %arg1: memref<8x32xf32, #tpu.memory_space<vmem>>, %arg2: memref<4x32xf32, #tpu.memory_space<vmem>>, %arg3: memref<4x1xf32, #tpu.memory_space<vmem>>, %arg4: memref<4x8xf32, #tpu.memory_space<vmem>>) attributes {dimension_semantics = [#tpu.dimension_semantics<parallel>], iteration_bounds = array<i64: 1>, scalar_prefetch = 0 : i64, scratch_operands = 0 : i64, tpu.core_type = #tpu.core_type<tc>, window_params = [{transform_indices = @transform_0, window_bounds = array<i64: 8, 32>}, {pipeline_mode = #tpu.pipeline_mode<synchronous>, transform_indices = @transform_1, window_bounds = array<i64: 4, 32>}, {pipeline_mode = #tpu.pipeline_mode<synchronous>, transform_indices = @transform_2, window_bounds = array<i64: 4, 1>}, {transform_indices = @transform_3, window_bounds = array<i64: 4, 8>}]} {
    %c0 = arith.constant 0 : index
    %c0_0 = arith.constant 0 : index
    %0 = vector.load %arg1[%c0, %c0_0] : memref<8x32xf32, #tpu.memory_space<vmem>>, vector<8x32xf32>
    %c0_1 = arith.constant 0 : index
    %c0_2 = arith.constant 0 : index
    %1 = vector.load %arg2[%c0_1, %c0_2] : memref<4x32xf32, #tpu.memory_space<vmem>>, vector<4x32xf32>
    %cst = arith.constant dense<0.000000e+00> : vector<4x8xf32>
    %2 = tpu.matmul %1, %0, %cst {dimension_numbers = #tpu.dot_dimension_numbers<[1], [1], [0], [0], [0, 0, 1, 0], [], []>} : vector<4x32xf32>, vector<8x32xf32>, vector<4x8xf32> -> vector<4x8xf32>
    %c0_3 = arith.constant 0 : index
    %c0_4 = arith.constant 0 : index
    %3 = vector.load %arg3[%c0_3, %c0_4] : memref<4x1xf32, #tpu.memory_space<vmem>>, vector<4x1xf32>
    %4 = vector.broadcast %3 : vector<4x1xf32> to vector<4x8xf32>
    %5 = arith.addf %2, %4 : vector<4x8xf32>
    %cst_5 = arith.constant 0.000000e+00 : f32
    %6 = vector.broadcast %cst_5 : f32 to vector<4x8xf32>
    %7 = arith.cmpf ogt, %5, %6 : vector<4x8xf32>
    %cst_6 = arith.constant 0.00999999977 : f32
    %8 = vector.broadcast %cst_6 : f32 to vector<4x8xf32>
    %9 = arith.mulf %8, %5 : vector<4x8xf32>
    %10 = arith.select %7, %5, %9 : vector<4x8xi1>, vector<4x8xf32>
    %11 = vector.extract_strided_slice %10 {offsets = [0, 0], sizes = [1, 8], strides = [1, 1]} : vector<4x8xf32> to vector<1x8xf32>
    %12 = vector.extract_strided_slice %10 {offsets = [1, 0], sizes = [1, 8], strides = [1, 1]} : vector<4x8xf32> to vector<1x8xf32>
    %13 = vector.extract_strided_slice %10 {offsets = [2, 0], sizes = [1, 8], strides = [1, 1]} : vector<4x8xf32> to vector<1x8xf32>
    %14 = vector.extract_strided_slice %10 {offsets = [3, 0], sizes = [1, 8], strides = [1, 1]} : vector<4x8xf32> to vector<1x8xf32>
    %15 = arith.maximumf %11, %12 : vector<1x8xf32>
    %16 = arith.maximumf %13, %14 : vector<1x8xf32>
    %17 = arith.maximumf %15, %16 : vector<1x8xf32>
    %18 = vector.broadcast %17 : vector<1x8xf32> to vector<4x8xf32>
    %19 = arith.subf %10, %18 : vector<4x8xf32>
    %20 = math.exp %19 : vector<4x8xf32>
    %21 = vector.extract_strided_slice %20 {offsets = [0, 0], sizes = [1, 8], strides = [1, 1]} : vector<4x8xf32> to vector<1x8xf32>
    %22 = vector.extract_strided_slice %20 {offsets = [1, 0], sizes = [1, 8], strides = [1, 1]} : vector<4x8xf32> to vector<1x8xf32>
    %23 = arith.addf %21, %22 : vector<1x8xf32>
    %24 = vector.extract_strided_slice %20 {offsets = [2, 0], sizes = [1, 8], strides = [1, 1]} : vector<4x8xf32> to vector<1x8xf32>
    %25 = arith.addf %23, %24 : vector<1x8xf32>
    %26 = vector.extract_strided_slice %20 {offsets = [3, 0], sizes = [1, 8], strides = [1, 1]} : vector<4x8xf32> to vector<1x8xf32>
    %27 = arith.addf %25, %26 : vector<1x8xf32>
    %28 = vector.broadcast %27 : vector<1x8xf32> to vector<4x8xf32>
    %29 = arith.divf %20, %28 : vector<4x8xf32>
    %c0_7 = arith.constant 0 : index
    %c0_8 = arith.constant 0 : index
    %30 = vector.load %arg4[%c0_7, %c0_8] : memref<4x8xf32, #tpu.memory_space<vmem>>, vector<4x8xf32>
    tpu.vector_store %arg4[%c0_7, %c0_8], %29 {strides = array<i32>} : memref<4x8xf32, #tpu.memory_space<vmem>>, vector<4x8xf32>,
    return
  }
  func.func @transform_0(%arg0: i32) -> (i32, i32) {
    %c0_i32 = arith.constant 0 : i32
    %c0_i32_0 = arith.constant 0 : i32
    return %arg0, %c0_i32 : i32, i32
  }
  func.func @transform_1(%arg0: i32) -> (i32, i32) {
    %c0_i32 = arith.constant 0 : i32
    %c0_i32_0 = arith.constant 0 : i32
    %c0_i32_1 = arith.constant 0 : i32
    return %c0_i32, %c0_i32_0 : i32, i32
  }
  func.func @transform_2(%arg0: i32) -> (i32, i32) {
    %c0_i32 = arith.constant 0 : i32
    %c0_i32_0 = arith.constant 0 : i32
    %c0_i32_1 = arith.constant 0 : i32
    return %c0_i32, %c0_i32_0 : i32, i32
  }
  func.func @transform_3(%arg0: i32) -> (i32, i32) {
    %c0_i32 = arith.constant 0 : i32
    %c0_i32_0 = arith.constant 0 : i32
    return %c0_i32, %arg0 : i32, i32
  }
}

</mosaic_0001>

<bundles_post_ra>
// kernel: tpu_custom_call.1
= control target key start
LH: loop header
LB: loop body
LE: loop exit
PB: predicated region body
PF: predicated region fallthrough
CT: control target
= control target key end

     0   :  { %8 = vsyncpa [#allocation3], 0  ;;  %s285_s0 = inlined_call_operand.hbm [shape: f32[8,32], index: 0, kind: input, shape index: {}]   ;;  %s286_s1 = inlined_call_operand.vmem [shape: f32[4,32], index: 1, kind: input, shape index: {}]   ;;  %s287_s2 = inlined_call_operand.vmem [shape: f32[4,1], index: 2, kind: input, shape index: {}]   ;;  %s288_s3 = inlined_call_operand.hbm [shape: f32[4,8], index: 3, kind: output, shape index: {}]  }
   0x1   :  { %9 = vsyncpa [#allocation4], 0  ;;  %s230_s12 = smov [#allocation2]   ;;  %s182_s16 = scalar_lea.hbm %s285_s0, 128 }
   0x2   :  { %s16_s13 = sshll.u32 %s230_s12, 4  ;;  %p183_p0 = scmp.ne.s32.totalorder %s285_s0, %s182_s16  ;;  %s17_s13 = int_to_ptr.vmem [resolvable:$true] %s16_s13 }
   0x3   :  { %p186_p1 = scmp.lt.u32.totalorder %s182_s16, %s285_s0 }
   0x5   :  { %p188_p2 = pnand %p186_p1, %p183_p0 }
   0x7   :  { %191 = shalt.err (!%p188_p2)
}
   0x8   :  { %s192_s21 = scalar_lea.vmem %s17_s13, 128  ;;  %p197_p4 = scmp.lt.s32.totalorder %s17_s13, %s17_s13 }
   0x9   :  { %p193_p3 = scmp.ne.s32.totalorder %s17_s13, %s192_s21  ;;  %p198_p5 = scmp.lt.s32.totalorder %s192_s21, %s192_s21 }
   0xb   :  { %p199_p6 = por %p198_p5, %p197_p4 }
   0xd   :  { %p200_p7 = pnand %p199_p6, %p193_p3 }
   0xf   :  { %203 = shalt.err (!%p200_p7)
}
  0x10   :  { %19 = dma.hbm_to_vmem [thread:$0]  %s285_s0, 128, %s17_s13, [#allocation3]  }
  0x11   :  { %226 = dma.done.wait [#allocation3], 128  }
  0x12   :  { %227 = vsyncadd [#allocation3], 4294967168  ;;  %v231_v0 = vmov 0.0   ;;  %vm232_vm0 = vmmov 0   ;;  %v233_v1 = vmov 0   ;;  %vm35_vm1 = vcmask 261120  }
  0x13   :  { %167 = vmatprep.subr.mxu0 %v231_v0  ;;  %169 = vmatprep.mubr.msk.f32.mxu0 %vm232_vm0, %v231_v0  ;;  %v27_v2 = vld [vmem:[#allocation2] sm:$0xff]  ;;  %v123_v9 = vlaneseq  ;;  %s234_s0 = smov [#allocation5]   ;;  %vm146_vm3 = vcmask 60416  }
  0x14   :  { %177 = vset.pattern.permute.xlu0 %v233_v1  ;;  %v29_v3 = vld [vmem:[%s287_s2] sm:$0xf]  ;;  %168 = vmatpush3.xpose.msk.msra.mxu0 %vm35_vm1, %v27_v2 }
  0x15   :  { %v28_v4 = vld [vmem:[%s286_s1] sm:$0xf]  ;;  %32 = vperm.xlu0 %177, %v29_v3   ;;  %v124_v13 = vshrl.u32 %v123_v9, 7  ;;  %s154_s1 = sshll.u32 %s234_s0, 4  ;;  %s155_s1 = int_to_ptr.vmem [resolvable:$true] %s154_s1 }
  0x16   :  { %s204_s2 = scalar_lea.vmem %s155_s1, 64  ;;  %p209_p9 = scmp.lt.s32.totalorder %s155_s1, %s155_s1 }
  0x17   :  { %170 = vmatmul.mubr.msk.f32.vlgmr.msra.gmra.mrb[0].mxu0 %vm35_vm1, %v28_v4  ;;  %v125_v16 = vsub.s32 0, %v124_v13  ;;  %p205_p8 = scmp.ne.s32.totalorder %s155_s1, %s204_s2  ;;  %p210_p10 = scmp.lt.s32.totalorder %s204_s2, %s204_s2 }
  0x19   :  { %p211_p11 = por %p210_p10, %p209_p9 }
  0x1b   :  { %p212_p12 = pnand %p211_p11, %p205_p8 }
  0x94   :  { %v33_v5 = vpop.permute.xlu0 %32 }
  0xea   :  { %v108_v6 = vpop.f32.mrb[0].mxu0 }
  0xeb   :  { %v109_v7 = vadd.f32 %v108_v6, %v33_v5  ;;  %v171_v8 = vpop.f32.mrb[1].mxu0 }
  0xed   :  { %vm112_vm2 = vcmp.gt.f32.partialorder %v109_v7, 0.0  ;;  %v113_v10 = vmul.f32 0.01, %v109_v7 }
  0xef   :  { %v114_v11 = vsel %vm112_vm2, %v109_v7, %v113_v10 }
  0xf0   :  { %v116_v12 = vrot.slane %v114_v11, 1 }
  0xf2   :  { %v118_v14 = vmax.f32 %v114_v11, %v116_v12 }
  0xf4   :  { %v120_v15 = vrot.slane %v118_v14, 2 }
  0xf6   :  { %v122_v17 = vmax.f32 %v118_v14, %v120_v15 }
  0xf8   :  { %v126_v18 = vrot.slane %v122_v17, %v125_v16 }
  0xfa   :  { %v127_v19 = vsub.f32 %v114_v11, %v126_v18 }
  0xfc   :  { %v128_v20 = vmul.f32 1.442695, %v127_v19 }
  0xfe   :  { %178 = vpow2.f32 %v128_v20 }
 0x108   :  { %v179_v21 = vpop.eup %178 }
 0x109   :  { %v131_v22 = vrot.slane %v179_v21, 1  ;;  %v134_v24 = vrot.slane %v179_v21, 2  ;;  %v137_v26 = vrot.slane %v179_v21, 3 }
 0x10b   :  { %v133_v23 = vadd.f32 %v179_v21, %v131_v22 }
 0x10d   :  { %v136_v25 = vadd.f32 %v134_v24, %v133_v23 }
 0x10f   :  { %v139_v27 = vadd.f32 %v137_v26, %v136_v25 }
 0x111   :  { %v143_v28 = vrot.slane %v139_v27, %v125_v16 }
 0x113   :  { %180 = vrcp.f32 %v143_v28 }
 0x11d   :  { %v181_v29 = vpop.eup %180 }
 0x11e   :  { %v145_v30 = vmul.f32 %v181_v29, %v179_v21 }
 0x120   :  { %147 = vst.msk [vmem:[#allocation5] sm:$0xf] %vm146_vm3, %v145_v30 }
 0x121   :  { %215 = shalt.err (!%p212_p12)
}
 0x122   :  { %s216_s30 = scalar_lea.hbm %s288_s3, 64 }
 0x123   :  { %p217_p13 = scmp.ne.s32.totalorder %s288_s3, %s216_s30  ;;  %p220_p0 = scmp.lt.u32.totalorder %s216_s30, %s288_s3 }
 0x125   :  { %p222_p1 = pnand %p220_p0, %p217_p13 }
 0x127   :  { %225 = shalt.err (!%p222_p1)
}
 0x128   :  { %157 = dma.vmem_to_hbm [thread:$0]  %s155_s1, 64, %s288_s3, [#allocation4]  }
 0x129   :  { %228 = dma.done.wait [#allocation4], 64  }
 0x12a   :  { %229 = vsyncadd [#allocation4], 4294967232 }
 0x12b   :  { %161 = vsyncpa [#allocation3], 1 }
 0x12c   :  { %162 = vsyncpa [#allocation4], 1 }

</bundles_post_ra>
